<compile_context>
chip_gen: v7x
topology: tpu7x:2x2x1
jax: 0.10.0
libtpu: 0.0.40
codegen_flags: <defaults>
</compile_context>

<pallas_src>
import jax
import jax.numpy as jnp
from jax.experimental import pallas as pl
from jax.experimental.pallas import tpu as pltpu

NUM_CLASS = 1
BBOX_SIZE = 4
OUT_DIM = NUM_CLASS + BBOX_SIZE + 1   # 6 channels: [class, x, y, w, h, conf]
S = 7

LANE = 128            # cells packed per lane-row
MAX_ROW_TILE = 1024   # rows (of 128 cells) per grid step -> 3 MiB per input block
EPS = 1e-8


def _round_up(x, m):
    return ((x + m - 1) // m) * m


def _yolo_loss_kernel(p_ref, t_ref, out_ref):
    """p_ref / t_ref: (OUT_DIM, r_tile, LANE) channel-planar tiles.

    out_ref: (8, LANE) float32 accumulator, resident across the grid axis.
    """
    @pl.when(pl.program_id(0) == 0)
    def _init():
        out_ref[...] = jnp.zeros_like(out_ref)

    # channel planes, each (r_tile, LANE); sqrt chain only on the w/h planes.
    d_cls = p_ref[0] - t_ref[0]
    d_x = p_ref[1] - t_ref[1]
    d_y = p_ref[2] - t_ref[2]
    d_w = jnp.sqrt(jnp.abs(p_ref[3]) + EPS) - jnp.sqrt(jnp.abs(t_ref[3]) + EPS)
    d_h = jnp.sqrt(jnp.abs(p_ref[4]) + EPS) - jnp.sqrt(jnp.abs(t_ref[4]) + EPS)
    t_conf = t_ref[5]
    d_conf = p_ref[5] - t_conf

    sq_conf = d_conf * d_conf
    coord = d_x * d_x + d_y * d_y + d_w * d_w + d_h * d_h
    obj = (t_conf >= 0.5).astype(jnp.float32)

    # per-cell loss (reference algebra, NUM_CLASS=1):
    #   obj*(2.5*(dx^2+dy^2+dw'^2+dh'^2) + dcls^2 + 0.5*dconf^2) + 0.5*dconf^2
    cell = obj * (2.5 * coord + d_cls * d_cls + 0.5 * sq_conf) + 0.5 * sq_conf

    # fold sublane groups into the small resident accumulator (pure VPU adds).
    out_ref[...] += jnp.sum(cell.reshape(-1, 8, LANE), axis=0)


@jax.jit
def yolo_v1_loss(predictions: jax.Array, labels: jax.Array) -> jax.Array:
    """predictions, labels: (B, S, S, OUT_DIM) float32. Returns scalar loss."""
    B, s1, s2, D = predictions.shape
    assert D == OUT_DIM
    N = B * s1 * s2

    p = predictions.reshape(N, D).astype(jnp.float32)
    t = labels.reshape(N, D).astype(jnp.float32)

    rows = _round_up(pl.cdiv(N, LANE), 8)
    r_tile = min(MAX_ROW_TILE, rows)
    rows = _round_up(rows, r_tile)            # every tile is full -> no in-kernel mask
    n_pad = rows * LANE
    if n_pad != N:
        # zero-padded cells have conf=0 and zero diffs -> contribute exactly 0.
        p = jnp.pad(p, ((0, n_pad - N), (0, 0)))
        t = jnp.pad(t, ((0, n_pad - N), (0, 0)))

    # channel-planar layout: (OUT_DIM, rows, 128).  The reorder fuses with the
    # padding copy (which is needed for almost every batch size anyway).
    p = p.reshape(rows, LANE, D).transpose(2, 0, 1)
    t = t.reshape(rows, LANE, D).transpose(2, 0, 1)

    num_tiles = rows // r_tile
    in_spec = pl.BlockSpec((OUT_DIM, r_tile, LANE), lambda i: (0, i, 0))

    partial = pl.pallas_call(
        _yolo_loss_kernel,
        out_shape=jax.ShapeDtypeStruct((8, LANE), jnp.float32),
        grid_spec=pltpu.PrefetchScalarGridSpec(
            num_scalar_prefetch=0,
            grid=(num_tiles,),
            in_specs=[in_spec, in_spec],
            out_specs=pl.BlockSpec((8, LANE), lambda i: (0, 0)),
        ),
        compiler_params=pltpu.CompilerParams(
            dimension_semantics=("arbitrary",),
            vmem_limit_bytes=32 * 1024 * 1024,
        ),
    )(p, t)
    return jnp.sum(partial)


def _reference_loss(predictions, labels):
    # pure-JAX reference mirroring the PyTorch module exactly
    pred_class = predictions[..., :NUM_CLASS]
    pred_conf = predictions[..., NUM_CLASS + BBOX_SIZE]
    pred_bbox = predictions[..., NUM_CLASS:NUM_CLASS + BBOX_SIZE]
    tgt_class = labels[..., :NUM_CLASS]
    tgt_conf = labels[..., NUM_CLASS + BBOX_SIZE]
    tgt_bbox = labels[..., NUM_CLASS:NUM_CLASS + BBOX_SIZE]

    lambda_obj = (tgt_conf >= 0.5).astype(jnp.float32)
    lambda_noobj = (tgt_conf < 0.5).astype(jnp.float32)

    loss_coord = (((pred_bbox[..., :2] - tgt_bbox[..., :2]) ** 2).mean(-1)
                  + ((jnp.sqrt(jnp.abs(pred_bbox[..., 2:4]) + 1e-08)
                      - jnp.sqrt(jnp.abs(tgt_bbox[..., 2:4]) + 1e-08)) ** 2).mean(-1))
    loss_confidence = (pred_conf - tgt_conf) ** 2
    loss_class = ((pred_class - tgt_class) ** 2).mean(-1)

    return (jnp.sum(5.0 * lambda_obj * loss_coord)
            + jnp.sum(lambda_obj * loss_confidence)
            + jnp.sum(lambda_obj * loss_class)
            + jnp.sum(0.5 * lambda_noobj * loss_confidence))


if __name__ == "__main__":
    # YOLO_V1_Loss has no learnable parameters; it only consumes
    # predictions & labels of shape (B, S, S, OUT_DIM).
    B = 2
    key = jax.random.PRNGKey(0)
    kp, kl, kc = jax.random.split(key, 3)

    predictions = jax.random.normal(kp, (B, S, S, OUT_DIM), dtype=jnp.float32)
    labels = jax.random.uniform(kl, (B, S, S, OUT_DIM), dtype=jnp.float32)
    # make target confidence a clean mix of obj / noobj cells
    conf = (jax.random.uniform(kc, (B, S, S)) > 0.5).astype(jnp.float32)
    labels = labels.at[..., NUM_CLASS + BBOX_SIZE].set(conf)

    loss = jax.block_until_ready(yolo_v1_loss(predictions, labels))
    ref = jax.block_until_ready(_reference_loss(predictions, labels))

    assert jnp.allclose(loss, ref, rtol=1e-4, atol=1e-4), (loss, ref)
    print("KERNEL_OK")
</pallas_src>

<mosaic_0001>
module attributes {stable_mosaic.version = 11 : i64} {
  func.func @_yolo_loss_kernel(%arg0: i32, %arg1: memref<6x8x128xf32, #tpu.memory_space<vmem>>, %arg2: memref<6x8x128xf32, #tpu.memory_space<vmem>>, %arg3: memref<8x128xf32, #tpu.memory_space<vmem>>) attributes {dimension_semantics = [#tpu.dimension_semantics<arbitrary>], iteration_bounds = array<i64: 1>, scalar_prefetch = 0 : i64, scratch_operands = 0 : i64, tpu.core_type = #tpu.core_type<tc>, window_params = [{transform_indices = @transform_0, window_bounds = array<i64: 6, 8, 128>}, {transform_indices = @transform_1, window_bounds = array<i64: 6, 8, 128>}, {pipeline_mode = #tpu.pipeline_mode<synchronous>, transform_indices = @transform_2, window_bounds = array<i64: 8, 128>}]} {
    %c0_i32 = arith.constant 0 : i32
    %0 = arith.cmpi eq, %arg0, %c0_i32 : i32
    %1 = arith.extui %0 : i1 to i32
    %c0_i32_0 = arith.constant 0 : i32
    %2 = arith.cmpi ne, %1, %c0_i32_0 : i32
    scf.if %2 {
      %cst_43 = arith.constant 0.000000e+00 : f32
      %77 = vector.broadcast %cst_43 : f32 to vector<8x128xf32>
      %c0_44 = arith.constant 0 : index
      %c0_45 = arith.constant 0 : index
      %78 = vector.load %arg3[%c0_44, %c0_45] : memref<8x128xf32, #tpu.memory_space<vmem>>, vector<8x128xf32>
      tpu.vector_store %arg3[%c0_44, %c0_45], %77 {strides = array<i32>} : memref<8x128xf32, #tpu.memory_space<vmem>>, vector<8x128xf32>,
    } else {
    }
    %c0 = arith.constant 0 : index
    %c0_1 = arith.constant 0 : index
    %c0_2 = arith.constant 0 : index
    %3 = vector.load %arg1[%c0, %c0_1, %c0_2] : memref<6x8x128xf32, #tpu.memory_space<vmem>>, vector<1x8x128xf32>
    %4 = vector.shape_cast %3 : vector<1x8x128xf32> to vector<8x128xf32>
    %c0_3 = arith.constant 0 : index
    %c0_4 = arith.constant 0 : index
    %c0_5 = arith.constant 0 : index
    %5 = vector.load %arg2[%c0_3, %c0_4, %c0_5] : memref<6x8x128xf32, #tpu.memory_space<vmem>>, vector<1x8x128xf32>
    %6 = vector.shape_cast %5 : vector<1x8x128xf32> to vector<8x128xf32>
    %7 = arith.subf %4, %6 : vector<8x128xf32>
    %c1 = arith.constant 1 : index
    %c0_6 = arith.constant 0 : index
    %c0_7 = arith.constant 0 : index
    %8 = vector.load %arg1[%c1, %c0_6, %c0_7] : memref<6x8x128xf32, #tpu.memory_space<vmem>>, vector<1x8x128xf32>
    %9 = vector.shape_cast %8 : vector<1x8x128xf32> to vector<8x128xf32>
    %c1_8 = arith.constant 1 : index
    %c0_9 = arith.constant 0 : index
    %c0_10 = arith.constant 0 : index
    %10 = vector.load %arg2[%c1_8, %c0_9, %c0_10] : memref<6x8x128xf32, #tpu.memory_space<vmem>>, vector<1x8x128xf32>
    %11 = vector.shape_cast %10 : vector<1x8x128xf32> to vector<8x128xf32>
    %12 = arith.subf %9, %11 : vector<8x128xf32>
    %c2 = arith.constant 2 : index
    %c0_11 = arith.constant 0 : index
    %c0_12 = arith.constant 0 : index
    %13 = vector.load %arg1[%c2, %c0_11, %c0_12] : memref<6x8x128xf32, #tpu.memory_space<vmem>>, vector<1x8x128xf32>
    %14 = vector.shape_cast %13 : vector<1x8x128xf32> to vector<8x128xf32>
    %c2_13 = arith.constant 2 : index
    %c0_14 = arith.constant 0 : index
    %c0_15 = arith.constant 0 : index
    %15 = vector.load %arg2[%c2_13, %c0_14, %c0_15] : memref<6x8x128xf32, #tpu.memory_space<vmem>>, vector<1x8x128xf32>
    %16 = vector.shape_cast %15 : vector<1x8x128xf32> to vector<8x128xf32>
    %17 = arith.subf %14, %16 : vector<8x128xf32>
    %c3 = arith.constant 3 : index
    %c0_16 = arith.constant 0 : index
    %c0_17 = arith.constant 0 : index
    %18 = vector.load %arg1[%c3, %c0_16, %c0_17] : memref<6x8x128xf32, #tpu.memory_space<vmem>>, vector<1x8x128xf32>
    %19 = vector.shape_cast %18 : vector<1x8x128xf32> to vector<8x128xf32>
    %20 = math.absf %19 : vector<8x128xf32>
    %cst = arith.constant 9.99999993E-9 : f32
    %21 = vector.broadcast %cst : f32 to vector<8x128xf32>
    %22 = arith.addf %20, %21 : vector<8x128xf32>
    %23 = math.sqrt %22 : vector<8x128xf32>
    %c3_18 = arith.constant 3 : index
    %c0_19 = arith.constant 0 : index
    %c0_20 = arith.constant 0 : index
    %24 = vector.load %arg2[%c3_18, %c0_19, %c0_20] : memref<6x8x128xf32, #tpu.memory_space<vmem>>, vector<1x8x128xf32>
    %25 = vector.shape_cast %24 : vector<1x8x128xf32> to vector<8x128xf32>
    %26 = math.absf %25 : vector<8x128xf32>
    %cst_21 = arith.constant 9.99999993E-9 : f32
    %27 = vector.broadcast %cst_21 : f32 to vector<8x128xf32>
    %28 = arith.addf %26, %27 : vector<8x128xf32>
    %29 = math.sqrt %28 : vector<8x128xf32>
    %30 = arith.subf %23, %29 : vector<8x128xf32>
    %c4 = arith.constant 4 : index
    %c0_22 = arith.constant 0 : index
    %c0_23 = arith.constant 0 : index
    %31 = vector.load %arg1[%c4, %c0_22, %c0_23] : memref<6x8x128xf32, #tpu.memory_space<vmem>>, vector<1x8x128xf32>
    %32 = vector.shape_cast %31 : vector<1x8x128xf32> to vector<8x128xf32>
    %33 = math.absf %32 : vector<8x128xf32>
    %cst_24 = arith.constant 9.99999993E-9 : f32
    %34 = vector.broadcast %cst_24 : f32 to vector<8x128xf32>
    %35 = arith.addf %33, %34 : vector<8x128xf32>
    %36 = math.sqrt %35 : vector<8x128xf32>
    %c4_25 = arith.constant 4 : index
    %c0_26 = arith.constant 0 : index
    %c0_27 = arith.constant 0 : index
    %37 = vector.load %arg2[%c4_25, %c0_26, %c0_27] : memref<6x8x128xf32, #tpu.memory_space<vmem>>, vector<1x8x128xf32>
    %38 = vector.shape_cast %37 : vector<1x8x128xf32> to vector<8x128xf32>
    %39 = math.absf %38 : vector<8x128xf32>
    %cst_28 = arith.constant 9.99999993E-9 : f32
    %40 = vector.broadcast %cst_28 : f32 to vector<8x128xf32>
    %41 = arith.addf %39, %40 : vector<8x128xf32>
    %42 = math.sqrt %41 : vector<8x128xf32>
    %43 = arith.subf %36, %42 : vector<8x128xf32>
    %c5 = arith.constant 5 : index
    %c0_29 = arith.constant 0 : index
    %c0_30 = arith.constant 0 : index
    %44 = vector.load %arg2[%c5, %c0_29, %c0_30] : memref<6x8x128xf32, #tpu.memory_space<vmem>>, vector<1x8x128xf32>
    %45 = vector.shape_cast %44 : vector<1x8x128xf32> to vector<8x128xf32>
    %c5_31 = arith.constant 5 : index
    %c0_32 = arith.constant 0 : index
    %c0_33 = arith.constant 0 : index
    %46 = vector.load %arg1[%c5_31, %c0_32, %c0_33] : memref<6x8x128xf32, #tpu.memory_space<vmem>>, vector<1x8x128xf32>
    %47 = vector.shape_cast %46 : vector<1x8x128xf32> to vector<8x128xf32>
    %48 = arith.subf %47, %45 : vector<8x128xf32>
    %49 = arith.mulf %48, %48 : vector<8x128xf32>
    %50 = arith.mulf %12, %12 : vector<8x128xf32>
    %51 = arith.mulf %17, %17 : vector<8x128xf32>
    %52 = arith.addf %50, %51 : vector<8x128xf32>
    %53 = arith.mulf %30, %30 : vector<8x128xf32>
    %54 = arith.addf %52, %53 : vector<8x128xf32>
    %55 = arith.mulf %43, %43 : vector<8x128xf32>
    %56 = arith.addf %54, %55 : vector<8x128xf32>
    %cst_34 = arith.constant 5.000000e-01 : f32
    %57 = vector.broadcast %cst_34 : f32 to vector<8x128xf32>
    %58 = arith.cmpf oge, %45, %57 : vector<8x128xf32>
    %59 = arith.extui %58 : vector<8x128xi1> to vector<8x128xi32>
    %60 = arith.sitofp %59 : vector<8x128xi32> to vector<8x128xf32>
    %cst_35 = arith.constant 2.500000e+00 : f32
    %61 = vector.broadcast %cst_35 : f32 to vector<8x128xf32>
    %62 = arith.mulf %61, %56 : vector<8x128xf32>
    %63 = arith.mulf %7, %7 : vector<8x128xf32>
    %64 = arith.addf %62, %63 : vector<8x128xf32>
    %cst_36 = arith.constant 5.000000e-01 : f32
    %65 = vector.broadcast %cst_36 : f32 to vector<8x128xf32>
    %66 = arith.mulf %65, %49 : vector<8x128xf32>
    %67 = arith.addf %64, %66 : vector<8x128xf32>
    %68 = arith.mulf %60, %67 : vector<8x128xf32>
    %cst_37 = arith.constant 5.000000e-01 : f32
    %69 = vector.broadcast %cst_37 : f32 to vector<8x128xf32>
    %70 = arith.mulf %69, %49 : vector<8x128xf32>
    %71 = arith.addf %68, %70 : vector<8x128xf32>
    %c0_38 = arith.constant 0 : index
    %c0_39 = arith.constant 0 : index
    %72 = vector.load %arg3[%c0_38, %c0_39] : memref<8x128xf32, #tpu.memory_space<vmem>>, vector<8x128xf32>
    %73 = vector.shape_cast %71 : vector<8x128xf32> to vector<1x8x128xf32>
    %cst_40 = arith.constant dense<0.000000e+00> : vector<8x128xf32>
    %74 = vector.multi_reduction <add>, %73, %cst_40 [0] : vector<1x8x128xf32> to vector<8x128xf32>
    %75 = arith.addf %72, %74 : vector<8x128xf32>
    %c0_41 = arith.constant 0 : index
    %c0_42 = arith.constant 0 : index
    %76 = vector.load %arg3[%c0_41, %c0_42] : memref<8x128xf32, #tpu.memory_space<vmem>>, vector<8x128xf32>
    tpu.vector_store %arg3[%c0_41, %c0_42], %75 {strides = array<i32>} : memref<8x128xf32, #tpu.memory_space<vmem>>, vector<8x128xf32>,
    return
  }
  func.func @transform_0(%arg0: i32) -> (i32, i32, i32) {
    %c0_i32 = arith.constant 0 : i32
    %c0_i32_0 = arith.constant 0 : i32
    %c0_i32_1 = arith.constant 0 : i32
    return %c0_i32, %arg0, %c0_i32_0 : i32, i32, i32
  }
  func.func @transform_1(%arg0: i32) -> (i32, i32, i32) {
    %c0_i32 = arith.constant 0 : i32
    %c0_i32_0 = arith.constant 0 : i32
    %c0_i32_1 = arith.constant 0 : i32
    return %c0_i32, %arg0, %c0_i32_0 : i32, i32, i32
  }
  func.func @transform_2(%arg0: i32) -> (i32, i32) {
    %c0_i32 = arith.constant 0 : i32
    %c0_i32_0 = arith.constant 0 : i32
    %c0_i32_1 = arith.constant 0 : i32
    return %c0_i32, %c0_i32_0 : i32, i32
  }
}

</mosaic_0001>

<bundles_post_ra>
// kernel: yolo_v1_loss.1
= control target key start
LH: loop header
LB: loop body
LE: loop exit
PB: predicated region body
PF: predicated region fallthrough
CT: control target
= control target key end

     0   :  { %v126_v58 = vmov 0.0   ;;  %s181_s0 = inlined_call_operand.vmem [shape: f32[6,8,128], index: 0, kind: input, shape index: {}]   ;;  %s182_s1 = inlined_call_operand.vmem [shape: f32[6,8,128], index: 1, kind: input, shape index: {}]   ;;  %s183_s2 = inlined_call_operand.vmem [shape: f32[8,128], index: 2, kind: output, shape index: {}]  }
   0x1   :  { %v110_v0 = vld [vmem:[%s181_s0 + $0x18] sm:$0xff]  ;;  %v112_v2 = vld [vmem:[%s181_s0 + $0x20] sm:$0xff]  ;;  %v106_v11 = vld [vmem:[%s181_s0 + $0x8] sm:$0xff] }
   0x2   :  { %v111_v1 = vld [vmem:[%s182_s1 + $0x18] sm:$0xff]  ;;  %v31_v3 = vand.u32 2147483647, %v110_v0  ;;  %v54_v5 = vand.u32 2147483647, %v112_v2  ;;  %v113_v6 = vld [vmem:[%s182_s1 + $0x20] sm:$0xff] }
   0x3   :  { %v42_v4 = vand.u32 2147483647, %v111_v1  ;;  %v65_v10 = vand.u32 2147483647, %v113_v6  ;;  %v107_v12 = vld [vmem:[%s182_s1 + $0x8] sm:$0xff]  ;;  %v108_v14 = vld [vmem:[%s181_s0 + $0x10] sm:$0xff] }
   0x4   :  { %v32_v7 = vadd.f32 1e-08, %v31_v3  ;;  %v55_v9 = vadd.f32 1e-08, %v54_v5  ;;  %v109_v15 = vld [vmem:[%s182_s1 + $0x10] sm:$0xff]  ;;  %v23_v16 = vsub.f32 %v106_v11, %v107_v12  ;;  %v114_v36 = vld [vmem:[%s182_s1 + $0x28] sm:$0xff] }
   0x5   :  { %v43_v8 = vadd.f32 1e-08, %v42_v4  ;;  %v66_v13 = vadd.f32 1e-08, %v65_v10  ;;  %v28_v17 = vsub.f32 %v108_v14, %v109_v15  ;;  %v115_v37 = vld [vmem:[%s181_s0 + $0x28] sm:$0xff]  ;;  %v16_v41 = vld [vmem:[%s181_s0] sm:$0xff] }
   0x6   :  { %118 = vrsqrt.f32 %v32_v7  ;;  %vm35_vm0 = vcmp.eq.f32.partialorder %v32_v7, inf  ;;  %v38_v19 = vand.u32 2147483648, %v32_v7  ;;  %v81_v20 = vmul.f32 %v23_v16, %v23_v16  ;;  %v17_v42 = vld [vmem:[%s182_s1] sm:$0xff] }
   0x7   :  { %120 = vrsqrt.f32 %v43_v8  ;;  %vm37_vm1 = vcmp.eq.f32.partialorder %v32_v7, 0.0  ;;  %vm46_vm2 = vcmp.eq.f32.partialorder %v43_v8, inf  ;;  %v49_v23 = vand.u32 2147483648, %v43_v8 }
   0x8   :  { %122 = vrsqrt.f32 %v55_v9  ;;  %vm48_vm3 = vcmp.eq.f32.partialorder %v43_v8, 0.0  ;;  %vm58_vm4 = vcmp.eq.f32.partialorder %v55_v9, inf  ;;  %v82_v26 = vmul.f32 %v28_v17, %v28_v17 }
   0x9   :  { %124 = vrsqrt.f32 %v66_v13  ;;  %v61_v29 = vand.u32 2147483648, %v55_v9  ;;  %vm60_vm5 = vcmp.eq.f32.partialorder %v55_v9, 0.0  ;;  %vm69_vm6 = vcmp.eq.f32.partialorder %v66_v13, inf }
   0xa   :  { %v72_v35 = vand.u32 2147483648, %v66_v13  ;;  %vm71_vm7 = vcmp.eq.f32.partialorder %v66_v13, 0.0  ;;  %v83_v40 = vadd.f32 %v82_v26, %v81_v20  ;;  %v79_v45 = vsub.f32 %v115_v37, %v114_v36 }
   0xb   :  { %v18_v48 = vsub.f32 %v16_v41, %v17_v42  ;;  %vm88_vm8 = vcmp.ge.f32.partialorder %v114_v36, 0.5 }
   0xc   :  { %v80_v51 = vmul.f32 %v79_v45, %v79_v45  ;;  %v116_v59 = vsel %vm88_vm8, 1.0, %v126_v58 }
   0xd   :  { %v92_v54 = vmul.f32 %v18_v48, %v18_v48 }
   0xe   :  { %v94_v56 = vmul.f32 0.5, %v80_v51 }
  0x10   :  { %v119_v18 = vpop.eup %118 }
  0x11   :  { %v121_v21 = vpop.eup %120  ;;  %v34_v22 = vmul.f32 %v119_v18, %v32_v7 }
  0x12   :  { %v123_v24 = vpop.eup %122  ;;  %v45_v25 = vmul.f32 %v121_v21, %v43_v8 }
  0x13   :  { %v36_v27 = vsel %vm35_vm0, %v32_v7, %v34_v22  ;;  %v57_v28 = vmul.f32 %v123_v24, %v55_v9  ;;  %v125_v32 = vpop.eup %124 }
  0x14   :  { %v39_v30 = vsel %vm37_vm1, %v38_v19, %v36_v27  ;;  %v47_v31 = vsel %vm46_vm2, %v43_v8, %v45_v25  ;;  %v68_v39 = vmul.f32 %v125_v32, %v66_v13 }
  0x15   :  { %v50_v33 = vsel %vm48_vm3, %v49_v23, %v47_v31  ;;  %v59_v34 = vsel %vm58_vm4, %v55_v9, %v57_v28 }
  0x16   :  { %v51_v38 = vsub.f32 %v39_v30, %v50_v33  ;;  %v62_v43 = vsel %vm60_vm5, %v61_v29, %v59_v34  ;;  %v70_v44 = vsel %vm69_vm6, %v66_v13, %v68_v39 }
  0x17   :  { %v73_v47 = vsel %vm71_vm7, %v72_v35, %v70_v44 }
  0x18   :  { %v84_v46 = vmul.f32 %v51_v38, %v51_v38  ;;  %v74_v49 = vsub.f32 %v62_v43, %v73_v47 }
  0x1a   :  { %v85_v50 = vadd.f32 %v84_v46, %v83_v40  ;;  %v86_v52 = vmul.f32 %v74_v49, %v74_v49 }
  0x1c   :  { %v87_v53 = vadd.f32 %v86_v52, %v85_v50 }
  0x1e   :  { %v91_v55 = vmul.f32 2.5, %v87_v53 }
  0x20   :  { %v93_v57 = vadd.f32 %v92_v54, %v91_v55 }
  0x22   :  { %v95_v60 = vadd.f32 %v94_v56, %v93_v57 }
  0x24   :  { %v96_v61 = vmul.f32 %v116_v59, %v95_v60 }
  0x26   :  { %v97_v62 = vadd.f32 %v96_v61, %v94_v56 }
  0x28   :  { %101 = vst [vmem:[%s183_s2] sm:$0xff] %v97_v62 }

</bundles_post_ra>
